<compile_context>
chip_gen: v7x
topology: tpu7x:2x2x1
jax: 0.10.0
libtpu: 0.0.40
codegen_flags: <defaults>
</compile_context>

<pallas_src>
import math
from functools import partial

import jax
import jax.numpy as jnp
from jax.experimental import pallas as pl
from jax.experimental.pallas import tpu as pltpu

_LANE = 128  # TPU vreg lane width


def _cosine_cutoff_kernel(x_ref, o_ref, *, half_scale, cutoff):
    # x_ref / o_ref: (tile_rows, tile_cols) tiles in VMEM.
    # half_scale = pi / (2 * cutoff); cutoff is a trace-time Python float.
    x = x_ref[...]
    c = jnp.cos(x * half_scale)
    cut = c * c  # == 0.5 * (cos(x * pi / cutoff) + 1.0)
    o_ref[...] = jnp.where(x < cutoff, cut, 0.0).astype(o_ref.dtype)


def _device_tuning():
    """Per-generation (block_bytes, vmem_limit_bytes, two_tensorcores)."""
    try:
        kind = jax.devices()[0].device_kind.lower()
    except Exception:
        kind = ""
    if "v7" in kind:
        # 3.2 TB/s HBM -> bigger blocks to amortize ~0.35us/step, but only
        # 64 MiB physical VMEM -> 4 MiB blocks (16 MiB resident) + headroom.
        return 4 << 20, 48 << 20, True
    if "v6" in kind:
        return 4 << 20, 64 << 20, False
    # v5e/v5p/v4/unknown: 2 MiB blocks (8 MiB resident) fit the 16 MiB
    # scoped-VMEM default; slower HBM already amortizes per-step overhead.
    return 2 << 20, None, False


def cosine_cutoff(x: jax.Array, cutoff: float) -> jax.Array:
    """Pallas TPU implementation of CosineCutoff.forward (any input shape)."""
    orig_shape = x.shape
    dtype = x.dtype
    total = int(x.size)
    if total == 0:
        return x

    itemsize = jnp.dtype(dtype).itemsize
    sublane = max(8, 32 // itemsize)  # 8 for f32, 16 for bf16, 32 for int8
    block_bytes, vmem_limit, two_tc = _device_tuning()
    max_block_elems = block_bytes // itemsize

    # ---- choose a copy-free 2-D view of the (contiguous) input -------------
    W = None
    for cand in (2048, 1024, 512, 256, 128):
        if total % cand == 0:
            W = cand  # lane-dense slab: unmasked, full-lane stores
            break
    if W is None:
        # Collapse leading dims; full trailing dim keeps the reshape free and
        # a full-width last-dim block is always legal (even if C % 128 != 0).
        if x.ndim >= 2:
            W = int(orig_shape[-1])
        else:
            W = total
    rows = total // W
    slab = x.reshape(rows, W)

    # ---- tile sizes ---------------------------------------------------------
    # Lane (last-dim) tile: full width unless it alone blows the block budget.
    if W <= max(max_block_elems // sublane, _LANE):
        tile_cols = W
    else:
        tile_cols = max(_LANE, (max_block_elems // sublane) // _LANE * _LANE)

    # Sublane (row) tile from the remaining per-block budget.
    tile_rows = max(sublane, (max_block_elems // tile_cols) // sublane * sublane)

    if two_tc:
        # Keep >= 2 grid steps so the "parallel" axes shard across both TCs.
        steps = pl.cdiv(rows, min(tile_rows, rows)) * pl.cdiv(W, tile_cols)
        if steps < 2 and rows > sublane:
            half = pl.cdiv(pl.cdiv(rows, 2), sublane) * sublane
            tile_rows = min(tile_rows, max(sublane, half))

    tile_rows = min(tile_rows, rows)  # == rows (full dim) is always legal

    grid = (pl.cdiv(rows, tile_rows), pl.cdiv(W, tile_cols))

    cutoff_f = float(cutoff)  # constant buffer in the module; traced cutoff unsupported
    kernel = partial(_cosine_cutoff_kernel,
                     half_scale=math.pi / (2.0 * cutoff_f),
                     cutoff=cutoff_f)

    cparams = dict(dimension_semantics=("parallel", "parallel"))
    if vmem_limit is not None:
        cparams["vmem_limit_bytes"] = vmem_limit

    out = pl.pallas_call(
        kernel,
        out_shape=jax.ShapeDtypeStruct((rows, W), dtype),
        grid_spec=pltpu.PrefetchScalarGridSpec(
            num_scalar_prefetch=0,
            grid=grid,
            in_specs=[pl.BlockSpec((tile_rows, tile_cols), lambda i, j: (i, j))],
            out_specs=pl.BlockSpec((tile_rows, tile_cols), lambda i, j: (i, j)),
        ),
        compiler_params=pltpu.CompilerParams(**cparams),
    )(slab)

    return out.reshape(orig_shape)


def _reference(x, cutoff):
    cut = 0.5 * (jnp.cos(x * math.pi / cutoff) + 1.0)
    return cut * (x < cutoff).astype(x.dtype)


if __name__ == "__main__":
    key = jax.random.PRNGKey(0)
    CUTOFF = 5.0

    k1, k2 = jax.random.split(key)

    # Case 1: module-typical (atoms x neighbor distances), non-128-multiple
    # trailing dim -> exercises the no-pad fallback (full-width blocks).
    x1 = jax.random.uniform(k1, (48, 100), dtype=jnp.float32,
                            minval=0.0, maxval=2.0 * CUTOFF)
    # Case 2: aligned size -> exercises the lane-dense slab path.
    x2 = jax.random.uniform(k2, (64, 256), dtype=jnp.float32,
                            minval=0.0, maxval=2.0 * CUTOFF)

    ok = True
    for x in (x1, x2):
        out = jax.block_until_ready(cosine_cutoff(x, CUTOFF))
        ref = _reference(x, CUTOFF)
        ok &= (out.shape == ref.shape and out.dtype == ref.dtype)
        ok &= bool(jnp.allclose(out, ref, atol=1e-5, rtol=1e-5))
    assert ok, "mismatch vs reference"

    print("KERNEL_OK")
</pallas_src>

<mosaic_0001>
module attributes {stable_mosaic.version = 11 : i64} {
  func.func @_cosine_cutoff_kernel(%arg0: i32, %arg1: i32, %arg2: memref<48x100xf32, #tpu.memory_space<vmem>>, %arg3: memref<48x100xf32, #tpu.memory_space<vmem>>) attributes {dimension_semantics = [#tpu.dimension_semantics<parallel>, #tpu.dimension_semantics<parallel>], iteration_bounds = array<i64: 1, 1>, scalar_prefetch = 0 : i64, scratch_operands = 0 : i64, tpu.core_type = #tpu.core_type<tc>, window_params = [{transform_indices = @transform_0, window_bounds = array<i64: 48, 100>}, {transform_indices = @transform_1, window_bounds = array<i64: 48, 100>}]} {
    %c0 = arith.constant 0 : index
    %c0_0 = arith.constant 0 : index
    %0 = vector.load %arg2[%c0, %c0_0] : memref<48x100xf32, #tpu.memory_space<vmem>>, vector<48x100xf32>
    %cst = arith.constant 0.314159274 : f32
    %1 = vector.broadcast %cst : f32 to vector<48x100xf32>
    %2 = arith.mulf %0, %1 : vector<48x100xf32>
    %3 = math.cos %2 : vector<48x100xf32>
    %4 = arith.mulf %3, %3 : vector<48x100xf32>
    %cst_1 = arith.constant 5.000000e+00 : f32
    %5 = vector.broadcast %cst_1 : f32 to vector<48x100xf32>
    %6 = arith.cmpf olt, %0, %5 : vector<48x100xf32>
    %cst_2 = arith.constant 0.000000e+00 : f32
    %7 = vector.broadcast %cst_2 : f32 to vector<48x100xf32>
    %8 = arith.select %6, %4, %7 : vector<48x100xi1>, vector<48x100xf32>
    %c0_3 = arith.constant 0 : index
    %c0_4 = arith.constant 0 : index
    %9 = vector.load %arg3[%c0_3, %c0_4] : memref<48x100xf32, #tpu.memory_space<vmem>>, vector<48x100xf32>
    tpu.vector_store %arg3[%c0_3, %c0_4], %8 {strides = array<i32>} : memref<48x100xf32, #tpu.memory_space<vmem>>, vector<48x100xf32>,
    return
  }
  func.func @transform_0(%arg0: i32, %arg1: i32) -> (i32, i32) {
    %c0_i32 = arith.constant 0 : i32
    return %arg0, %arg1 : i32, i32
  }
  func.func @transform_1(%arg0: i32, %arg1: i32) -> (i32, i32) {
    %c0_i32 = arith.constant 0 : i32
    return %arg0, %arg1 : i32, i32
  }
}

</mosaic_0001>

<bundles_post_ra>
// kernel: tpu_custom_call.1
= control target key start
LH: loop header
LB: loop body
LE: loop exit
PB: predicated region body
PF: predicated region fallthrough
CT: control target
= control target key end

     0   :  { %6 = vsyncpa [#allocation3], 0  ;;  %s1371_s0 = inlined_call_operand.hbm [shape: f32[48,100], index: 0, kind: input, shape index: {}]   ;;  %s1372_s1 = inlined_call_operand.hbm [shape: f32[48,100], index: 1, kind: output, shape index: {}]  }
   0x1   :  { %7 = vsyncpa [#allocation4], 0  ;;  %s826_s6 = smov [#allocation2]   ;;  %s778_s10 = scalar_lea.hbm %s1371_s0, 768 }
   0x2   :  { %s13_s7 = sshll.u32 %s826_s6, 4  ;;  %p779_p0 = scmp.ne.s32.totalorder %s1371_s0, %s778_s10  ;;  %s14_s7 = int_to_ptr.vmem [resolvable:$true] %s13_s7 }
   0x3   :  { %p782_p1 = scmp.lt.u32.totalorder %s778_s10, %s1371_s0 }
   0x5   :  { %p784_p2 = pnand %p782_p1, %p779_p0 }
   0x7   :  { %787 = shalt.err (!%p784_p2)
}
   0x8   :  { %s788_s15 = scalar_lea.vmem %s14_s7, 768  ;;  %p793_p4 = scmp.lt.s32.totalorder %s14_s7, %s14_s7 }
   0x9   :  { %p789_p3 = scmp.ne.s32.totalorder %s14_s7, %s788_s15  ;;  %p794_p5 = scmp.lt.s32.totalorder %s788_s15, %s788_s15 }
   0xb   :  { %p795_p6 = por %p794_p5, %p793_p4 }
   0xd   :  { %p796_p7 = pnand %p795_p6, %p789_p3 }
   0xf   :  { %799 = shalt.err (!%p796_p7)
}
  0x10   :  { %s827_s16 = smov 128   ;;  %s828_s17 = smov 8  }
  0x11   :  { %19 = dma.hbm_to_vmem [thread:$0]  %s1371_s0, 768, %s14_s7, [#allocation3], %s827_s16, %s827_s16, %s828_s17  }
  0x12   :  { %822 = dma.done.wait [#allocation3], 768  }
  0x13   :  { %823 = vsyncadd [#allocation3], 4294966528  ;;  %v861_v0 = vld [vmem:[#allocation2] sm:$0xff]  ;;  %v863_v1 = vld [vmem:[#allocation2 + $0x8] sm:$0xff]  ;;  %v829_v35 = vmov 683565275  }
  0x14   :  { %v865_v2 = vld [vmem:[#allocation2 + $0x10] sm:$0xff]  ;;  %v868_v3 = vmul.f32 0.31415927, %v861_v0  ;;  %v871_v4 = vmul.f32 0.31415927, %v863_v1  ;;  %v26_v18 = vld [vmem:[#allocation2 + $0x18] sm:$0xff] }
  0x15   :  { %v874_v5 = vmul.f32 0.31415927, %v865_v2  ;;  %v885_v24 = vmul.f32 0.31415927, %v26_v18  ;;  %v830_v37 = vmov 2475754826  }
  0x16   :  { %v35_v6 = vand.u32 2147483647, %v868_v3  ;;  %v38_v7 = vand.u32 2139095040, %v868_v3  ;;  %v138_v8 = vand.u32 2147483647, %v871_v4  ;;  %v141_v9 = vand.u32 2139095040, %v871_v4 }
  0x17   :  { %v244_v14 = vand.u32 2139095040, %v874_v5  ;;  %v241_v29 = vand.u32 2147483647, %v874_v5  ;;  %v831_v39 = vmov 2131351028   ;;  %s835_s0 = smov [#allocation5]  }
  0x18   :  { %v39_v10 = vshrl.u32 %v38_v7, 23  ;;  %v42_v11 = vand.u32 8388607, %v35_v6  ;;  %v142_v12 = vshrl.u32 %v141_v9, 23  ;;  %v145_v13 = vand.u32 8388607, %v138_v8 }
  0x19   :  { %v245_v17 = vshrl.u32 %v244_v14, 23  ;;  %v832_v41 = vmov 2102212464   ;;  %v833_v43 = vmov 920167782   ;;  %s683_s20 = sshll.u32 %s835_s0, 4  ;;  %s684_s20 = int_to_ptr.vmem [resolvable:$true] %s683_s20 }
  0x1a   :  { %v695_v15 = vadd.s32 4294967169, %v39_v10  ;;  %v699_v16 = vadd.s32 4294967169, %v142_v12  ;;  %v43_v20 = vor.u32 8388608, %v42_v11  ;;  %v146_v21 = vor.u32 8388608, %v145_v13  ;;  %s800_s21 = scalar_lea.vmem %s684_s20, 768  ;;  %p805_p9 = scmp.lt.s32.totalorder %s684_s20, %s684_s20 }
  0x1b   :  { %v703_v23 = vadd.s32 4294967169, %v245_v17  ;;  %v834_v51 = vmov 1326507024   ;;  %p801_p8 = scmp.ne.s32.totalorder %s684_s20, %s800_s21  ;;  %p806_p10 = scmp.lt.s32.totalorder %s800_s21, %s800_s21 }
  0x1c   :  { %v45_v19 = vadd.s32 1, %v695_v15  ;;  %v148_v22 = vadd.s32 1, %v699_v16  ;;  %v888_v30 = vshll.u32 %v43_v20, 8  ;;  %v890_v32 = vshll.u32 %v146_v21, 8 }
  0x1d   :  { %v892_v33 = vadd.s32 1, %v703_v23  ;;  %p807_p11 = por %p806_p10, %p805_p9 }
  0x1e   :  { %vm46_vm0 = vcmp.gt.s32.totalorder %v45_v19, 0  ;;  %vm149_vm1 = vcmp.gt.s32.totalorder %v148_v22, 0 }
  0x1f   :  { %v47_v25 = vsel %vm46_vm0, %v45_v19, 0  ;;  %v150_v28 = vsel %vm149_vm1, %v148_v22, 0  ;;  %vm252_vm6 = vcmp.gt.s32.totalorder %v892_v33, 0  ;;  %vm37_vm0 = vcmp.lt.s32.totalorder %v868_v3, 0  ;;  %p808_p12 = pnand %p807_p11, %p801_p8 }
  0x20   :  { %v48_v26 = vshrl.u32 %v47_v25, 5  ;;  %v49_v27 = vand.u32 31, %v47_v25  ;;  %v152_v31 = vand.u32 31, %v150_v28  ;;  %v899_v45 = vshrl.u32 %v150_v28, 5 }
  0x22   :  { %v50_v34 = vsub.s32 32, %v49_v27  ;;  %v52_v36 = vshll.u32 %v829_v35, %v49_v27  ;;  %v55_v38 = vshll.u32 %v830_v37, %v49_v27  ;;  %v58_v40 = vshll.u32 %v831_v39, %v49_v27 }
  0x23   :  { %v61_v42 = vshll.u32 %v832_v41, %v49_v27  ;;  %v64_v44 = vshll.u32 %v833_v43, %v49_v27  ;;  %vm67_vm2 = vcmp.lt.s32.totalorder %v48_v26, 1  ;;  %vm68_vm3 = vcmp.lt.s32.totalorder %v48_v26, 2 }
  0x24   :  { %v51_v46 = vshrl.u32 %v829_v35, %v50_v34  ;;  %v53_v47 = vshrl.u32 %v830_v37, %v50_v34  ;;  %v56_v48 = vshrl.u32 %v831_v39, %v50_v34  ;;  %v59_v49 = vshrl.u32 %v832_v41, %v50_v34 }
  0x25   :  { %v62_v50 = vshrl.u32 %v833_v43, %v50_v34  ;;  %v65_v52 = vshrl.u32 %v834_v51, %v50_v34  ;;  %vm70_vm4 = vcmp.lt.s32.totalorder %v48_v26, 4  ;;  %v153_v56 = vsub.s32 32, %v152_v31 }
  0x26   :  { %v54_v53 = vor.u32 %v53_v47, %v52_v36  ;;  %v57_v54 = vor.u32 %v56_v48, %v55_v38  ;;  %v60_v55 = vor.u32 %v59_v49, %v58_v40  ;;  %vm69_vm5 = vcmp.lt.s32.totalorder %v48_v26, 3 }
  0x27   :  { %v63_v57 = vor.u32 %v62_v50, %v61_v42  ;;  %v66_v58 = vor.u32 %v65_v52, %v64_v44  ;;  %v155_v59 = vshll.u32 %v829_v35, %v152_v31  ;;  %v158_v11 = vshll.u32 %v830_v37, %v152_v31 }
  0x28   :  { %v71_v60 = vsel %vm67_vm2, %v51_v46, %v54_v53  ;;  %v72_v61 = vsel %vm70_vm4, %v60_v55, 2102212464  ;;  %v75_v62 = vsel %vm67_vm2, %v54_v53, %v57_v54  ;;  %v79_v63 = vsel %vm67_vm2, %v57_v54, %v60_v55 }
  0x29   :  { %v73_v7 = vsel %vm69_vm5, %v57_v54, %v72_v61  ;;  %v76_v9 = vsel %vm70_vm4, %v63_v57, 920167782  ;;  %v80_v10 = vsel %vm70_vm4, %v66_v58, 1326507024  ;;  %v154_v14 = vshrl.u32 %v829_v35, %v153_v56 }
  0x2a   :  { %v77_v12 = vsel %vm69_vm5, %v60_v55, %v76_v9  ;;  %v81_v13 = vsel %vm69_vm5, %v63_v57, %v80_v10  ;;  %v156_v15 = vshrl.u32 %v830_v37, %v153_v56  ;;  %v74_v16 = vsel %vm68_vm3, %v71_v60, %v73_v7  ;;  %v957_v10 = vld [vmem:[#allocation2 + $0x20] sm:$0xff] }
  0x2b   :  { %v78_v17 = vsel %vm68_vm3, %v75_v62, %v77_v12  ;;  %v82_v18 = vsel %vm68_vm3, %v79_v63, %v81_v13  ;;  %v159_v19 = vshrl.u32 %v831_v39, %v153_v56  ;;  %v161_v28 = vshll.u32 %v831_v39, %v152_v31 }
  0x2c   :  { %v920_v20 = vmul.u32.u64.low %v888_v30, %v82_v18  ;;  %v921_v21 = vmul.u32.u64.high %v888_v30, %v82_v18, %v920_v20  ;;  %v924_v22 = vmul.u32.u64.low %v888_v30, %v78_v17  ;;  %v925_v23 = vmul.u32.u64.high %v888_v30, %v78_v17, %v924_v22 }
  0x2d   :  { %v157_v25 = vor.u32 %v156_v15, %v155_v59  ;;  %v160_v27 = vor.u32 %v159_v19, %v158_v11  ;;  %v162_v34 = vshrl.u32 %v832_v41, %v153_v56  ;;  %v164_v26 = vshll.u32 %v832_v41, %v152_v31 }
  0x2e   :  { %v165_v36 = vshrl.u32 %v833_v43, %v153_v56  ;;  %v167_v38 = vshll.u32 %v833_v43, %v152_v31  ;;  %v168_v40 = vshrl.u32 %v834_v51, %v153_v56  ;;  %v90_v42 = vmul.u32 %v888_v30, %v74_v16 }
  0x2f   :  { %v163_v44 = vor.u32 %v162_v34, %v161_v28  ;;  %vm170_vm7 = vcmp.lt.s32.totalorder %v899_v45, 1  ;;  %vm171_vm8 = vcmp.lt.s32.totalorder %v899_v45, 2  ;;  %vm92_vm9 = vc.u32 %v921_v21, %v924_v22 }
  0x30   :  { %v93_v46 = vadd.s32 1, %v925_v23  ;;  %v166_v47 = vor.u32 %v165_v36, %v164_v26  ;;  %vm172_vm10 = vcmp.lt.s32.totalorder %v899_v45, 3  ;;  %v169_v48 = vor.u32 %v168_v40, %v167_v38 }
  0x31   :  { %vm173_vm11 = vcmp.lt.s32.totalorder %v899_v45, 4  ;;  %v174_v31 = vsel %vm170_vm7, %v154_v14, %v157_v25  ;;  %v178_v49 = vsel %vm170_vm7, %v157_v25, %v160_v27  ;;  %v182_v53 = vsel %vm170_vm7, %v160_v27, %v163_v44  ;;  %v966_v14 = vld [vmem:[#allocation2 + $0x28] sm:$0xff] }
  0x32   :  { %v94_v30 = vsel %vm92_vm9, %v93_v46, %v925_v23  ;;  %v175_v50 = vsel %vm173_vm11, %v163_v44, 2102212464  ;;  %v179_v52 = vsel %vm173_vm11, %v166_v47, 920167782  ;;  %v183_v57 = vsel %vm173_vm11, %v169_v48, 1326507024 }
  0x33   :  { %v95_v54 = vadd.s32 %v94_v30, %v90_v42  ;;  %v176_v55 = vsel %vm172_vm10, %v160_v27, %v175_v50  ;;  %v180_v56 = vsel %vm172_vm10, %v163_v44, %v179_v52  ;;  %v184_v60 = vsel %vm172_vm10, %v166_v47, %v183_v57 }
  0x34   :  { %v177_v58 = vsel %vm171_vm8, %v174_v31, %v176_v55  ;;  %v181_v59 = vsel %vm171_vm8, %v178_v49, %v180_v56  ;;  %v253_v61 = vsel %vm252_vm6, %v892_v33, 0  ;;  %v185_v63 = vsel %vm171_vm8, %v182_v53, %v184_v60 }
  0x35   :  { %v96_v62 = vadd.s32 536870912, %v95_v54  ;;  %v953_v7 = vmul.u32.u64.low %v890_v32, %v181_v59  ;;  %v954_v9 = vmul.u32.u64.high %v890_v32, %v181_v59, %v953_v7  ;;  %v248_v13 = vand.u32 8388607, %v241_v29 }
  0x36   :  { %v960_v11 = vmul.u32.u64.low %v890_v32, %v185_v63  ;;  %v961_v12 = vmul.u32.u64.high %v890_v32, %v185_v63, %v960_v11  ;;  %v347_v33 = vand.u32 2139095040, %v885_v24  ;;  %v255_v15 = vand.u32 31, %v253_v61 }
  0x37   :  { %v968_v45 = vshrl.u32 %v96_v62, 30  ;;  %v193_v16 = vmul.u32 %v890_v32, %v177_v58  ;;  %v972_v17 = vmul.f32 0.31415927, %v957_v10  ;;  %v196_v19 = vadd.s32 1, %v954_v9 }
  0x38   :  { %v256_v20 = vsub.s32 32, %v255_v15  ;;  %v977_v23 = vmul.f32 0.31415927, %v966_v14  ;;  %vm195_vm12 = vc.u32 %v961_v12, %v953_v7  ;;  %v249_v25 = vor.u32 8388608, %v248_v13 }
  0x39   :  { %v98_v18 = vshll.u32 %v968_v45, 30  ;;  %v348_v27 = vshrl.u32 %v347_v33, 23  ;;  %v197_v32 = vsel %vm195_vm12, %v196_v19, %v954_v9  ;;  %v254_v34 = vshrl.u32 %v253_v61, 5 }
  0x3a   :  { %v344_v26 = vand.u32 2147483647, %v885_v24  ;;  %v198_v36 = vadd.s32 %v197_v32, %v193_v16  ;;  %v258_v38 = vshll.u32 %v829_v35, %v255_v15  ;;  %v259_v40 = vshrl.u32 %v830_v37, %v256_v20 }
  0x3b   :  { %v981_v28 = vsub.s32 %v95_v54, %v98_v18  ;;  %v261_v42 = vshll.u32 %v830_v37, %v255_v15  ;;  %v262_v46 = vshrl.u32 %v831_v39, %v256_v20  ;;  %v264_v47 = vshll.u32 %v831_v39, %v255_v15 }
  0x3c   :  { %v265_v48 = vshrl.u32 %v832_v41, %v256_v20  ;;  %v199_v31 = vadd.s32 536870912, %v198_v36  ;;  %v267_v49 = vshll.u32 %v832_v41, %v255_v15  ;;  %v993_v30 = vshll.u32 %v249_v25, 8 }
  0x3d   :  { %v101_v44 = vsub.s32 0, %v981_v28  ;;  %v707_v50 = vadd.s32 4294967169, %v348_v27  ;;  %v91_v52 = vadd.s32 %v924_v22, %v921_v21  ;;  %v257_v54 = vshrl.u32 %v829_v35, %v256_v20 }
  0x3e   :  { %vm276_vm13 = vcmp.lt.s32.totalorder %v254_v34, 4  ;;  %v999_v55 = vshrl.u32 %v199_v31, 30  ;;  %v260_v56 = vor.u32 %v259_v40, %v258_v38  ;;  %v268_v57 = vshrl.u32 %v833_v43, %v256_v20 }
  0x3f   :  { %v696_v53 = vmin.u32 %v101_v44, %v981_v28  ;;  %v270_v58 = vshll.u32 %v833_v43, %v255_v15  ;;  %v263_v60 = vor.u32 %v262_v46, %v261_v42  ;;  %v266_v61 = vor.u32 %v265_v48, %v264_v47 }
  0x40   :  { %v271_v62 = vshrl.u32 %v834_v51, %v256_v20  ;;  %v201_v63 = vshll.u32 %v999_v55, 30  ;;  %v269_v21 = vor.u32 %v268_v57, %v267_v49  ;;  %vm273_vm14 = vcmp.lt.s32.totalorder %v254_v34, 1 }
  0x41   :  { %v103_v59 = vclz %v696_v53  ;;  %vm275_vm15 = vcmp.lt.s32.totalorder %v254_v34, 3  ;;  %v278_v11 = vsel %vm276_vm13, %v266_v61, 2102212464  ;;  %v354_v13 = vadd.s32 1, %v707_v50 }
  0x42   :  { %v272_v9 = vor.u32 %v271_v62, %v270_v58  ;;  %v1007_v33 = vsub.s32 %v198_v36, %v201_v63  ;;  %vm274_vm1 = vcmp.lt.s32.totalorder %v254_v34, 2  ;;  %v277_v15 = vsel %vm273_vm14, %v257_v54, %v260_v56 }
  0x43   :  { %v697_v22 = vadd.s32 4294967294, %v103_v59  ;;  %v282_v16 = vsel %vm276_vm13, %v269_v21, 920167782  ;;  %v281_v18 = vsel %vm273_vm14, %v260_v56, %v263_v60  ;;  %v279_v32 = vsel %vm275_vm15, %v263_v60, %v278_v11 }
  0x44   :  { %v283_v19 = vsel %vm275_vm15, %v266_v61, %v282_v16  ;;  %v286_v20 = vsel %vm276_vm13, %v272_v9, 1326507024  ;;  %v204_v27 = vsub.s32 0, %v1007_v33  ;;  %v285_v36 = vsel %vm273_vm14, %v263_v60, %v266_v61 }
  0x45   :  { %vm698_vm2 = vcmp.lt.s32.totalorder %v697_v22, 0  ;;  %v287_v44 = vsel %vm275_vm15, %v269_v21, %v286_v20  ;;  %v121_v46 = vsub.s32 4, %v968_v45  ;;  %v284_v48 = vsel %vm274_vm1, %v281_v18, %v283_v19 }
  0x46   :  { %v106_v25 = vsel %vm698_vm2, 0, %v697_v22  ;;  %v700_v47 = vmin.u32 %v204_v27, %v1007_v33  ;;  %v1024_v31 = vand.u32 8388607, %v344_v26  ;;  %v280_v53 = vsel %vm274_vm1, %v277_v15, %v279_v32 }
  0x47   :  { %v107_v38 = vsub.s32 32, %v106_v25  ;;  %v108_v40 = vshll.u32 %v981_v28, %v106_v25  ;;  %v111_v42 = vsub.s32 4294967266, %v106_v25  ;;  %v288_v54 = vsel %vm274_vm1, %v285_v36, %v287_v44 }
  0x48   :  { %v206_v28 = vclz %v700_v47  ;;  %v1029_v56 = vmul.u32.u64.low %v993_v30, %v288_v54  ;;  %v1030_v57 = vmul.u32.u64.high %v993_v30, %v288_v54, %v1029_v56  ;;  %vm355_vm3 = vcmp.gt.s32.totalorder %v354_v13, 0 }
  0x49   :  { %v109_v49 = vshrl.u32 %v91_v52, %v107_v38  ;;  %v112_v50 = vadd.s32 127, %v111_v42  ;;  %v1033_v60 = vmul.u32.u64.low %v993_v30, %v284_v48  ;;  %v1034_v61 = vmul.u32.u64.high %v993_v30, %v284_v48, %v1033_v60 }
  0x4a   :  { %vm1039_vm4 = vcmp.le.f32.partialorder %v35_v6, 0.7853982  ;;  %v701_v34 = vadd.s32 4294967294, %v206_v28  ;;  %v352_v62 = vor.u32 8388608, %v1024_v31  ;;  %v356_v63 = vsel %vm355_vm3, %v354_v13, 0 }
  0x4b   :  { %v110_v58 = vor.u32 %v109_v49, %v108_v40  ;;  %v113_v59 = vshll.u32 %v112_v50, 23  ;;  %v122_v9 = vsel %vm37_vm0, %v121_v46, %v968_v45  ;;  %v358_v11 = vand.u32 31, %v356_v63 }
  0x4c   :  { %vm140_vm5 = vcmp.lt.s32.totalorder %v871_v4, 0  ;;  %v194_v15 = vadd.s32 %v953_v7, %v961_v12  ;;  %vm702_vm6 = vcmp.lt.s32.totalorder %v701_v34, 0  ;;  %v296_v6 = vmul.u32 %v993_v30, %v280_v53 }
  0x4d   :  { %v114_v21 = vor.u32 4788187, %v113_v59  ;;  %v117_v22 = vcvt.s32.f32 %v110_v58  ;;  %vm298_vm7 = vc.u32 %v1030_v57, %v1033_v60  ;;  %v209_v13 = vsel %vm702_vm6, 0, %v701_v34 }
  0x4e   :  { %v299_v18 = vadd.s32 1, %v1034_v61  ;;  %v359_v19 = vsub.s32 32, %v358_v11  ;;  %v124_v45 = vsel %vm1039_vm4, 0, %v122_v9  ;;  %v210_v20 = vsub.s32 32, %v209_v13 }
  0x4f   :  { %v115_v16 = vand.u32 2147483647, %v114_v21  ;;  %v211_v25 = vshll.u32 %v1007_v33, %v209_v13  ;;  %v214_v27 = vsub.s32 4294967266, %v209_v13  ;;  %v224_v7 = vsub.s32 4, %v999_v55 }
  0x50   :  { %v300_v12 = vsel %vm298_vm7, %v299_v18, %v1034_v61  ;;  %v1059_v30 = vshrl.u32 %v356_v63, 5  ;;  %vm1063_vm8 = vcmp.le.f32.partialorder %v138_v8, 0.7853982  ;;  %v212_v38 = vshrl.u32 %v194_v15, %v210_v20 }
  0x51   :  { %v118_v32 = vmul.f32 %v117_v22, %v115_v16  ;;  %v215_v40 = vadd.s32 127, %v214_v27  ;;  %v301_v42 = vadd.s32 %v300_v12, %v296_v6  ;;  %v361_v44 = vshll.u32 %v829_v35, %v358_v11 }
  0x52   :  { %v362_v46 = vshrl.u32 %v830_v37, %v359_v19  ;;  %v364_v47 = vshll.u32 %v830_v37, %v358_v11  ;;  %v365_v48 = vshrl.u32 %v831_v39, %v359_v19  ;;  %v213_v49 = vor.u32 %v212_v38, %v211_v25 }
  0x53   :  { %v119_v33 = vxor.u32 2147483648, %v118_v32  ;;  %v216_v50 = vshll.u32 %v215_v40, 23  ;;  %v302_v53 = vadd.s32 536870912, %v301_v42  ;;  %v367_v8 = vshll.u32 %v831_v39, %v358_v11 }
  0x54   :  { %v368_v28 = vshrl.u32 %v832_v41, %v359_v19  ;;  %v370_v56 = vshll.u32 %v832_v41, %v358_v11  ;;  %v371_v58 = vshrl.u32 %v833_v43, %v359_v19  ;;  %v220_v34 = vcvt.s32.f32 %v213_v49 }
  0x55   :  { %v120_v54 = vsel %vm37_vm0, %v119_v33, %v118_v32  ;;  %v217_v61 = vor.u32 4788187, %v216_v50  ;;  %v303_v63 = vshrl.u32 %v302_v53, 30  ;;  %v225_v21 = vsel %vm140_vm5, %v224_v7, %v999_v55 }
  0x56   :  { %v123_v59 = vsel %vm1039_vm4, %v868_v3, %v120_v54  ;;  %v360_v22 = vshrl.u32 %v829_v35, %v359_v19  ;;  %v363_v9 = vor.u32 %v362_v46, %v361_v44  ;;  %v373_v15 = vshll.u32 %v833_v43, %v358_v11 }
  0x57   :  { %753 = vcosq.f32 %v123_v59  ;;  %v218_v6 = vand.u32 2147483647, %v217_v61  ;;  %v304_v16 = vshll.u32 %v303_v63, 30  ;;  %v366_v13 = vor.u32 %v365_v48, %v364_v47 }
  0x58   :  { %755 = vsinq.f32 %v123_v59  ;;  %v369_v18 = vor.u32 %v368_v28, %v367_v8  ;;  %v372_v52 = vor.u32 %v371_v58, %v370_v56  ;;  %v374_v20 = vshrl.u32 %v834_v51, %v359_v19 }
  0x59   :  { %v221_v25 = vmul.f32 %v220_v34, %v218_v6  ;;  %v1086_v27 = vsub.s32 %v301_v42, %v304_v16  ;;  %vm376_vm9 = vcmp.lt.s32.totalorder %v1059_v30, 1  ;;  %vm379_vm10 = vcmp.lt.s32.totalorder %v1059_v30, 4 }
  0x5a   :  { %v1090_v55 = vand.u32 3, %v124_v45  ;;  %v227_v11 = vsel %vm1063_vm8, 0, %v225_v21  ;;  %vm243_vm11 = vcmp.lt.s32.totalorder %v874_v5, 0  ;;  %v375_v32 = vor.u32 %v374_v20, %v373_v15 }
  0x5b   :  { %v392_v7 = vshll.u32 %v352_v62, 8  ;;  %v222_v12 = vxor.u32 2147483648, %v221_v25  ;;  %v307_v19 = vsub.s32 0, %v1086_v27  ;;  %vm378_vm12 = vcmp.lt.s32.totalorder %v1059_v30, 3 }
  0x5c   :  { %v381_v38 = vsel %vm379_vm10, %v369_v18, 2102212464  ;;  %v327_v40 = vsub.s32 4, %v303_v63  ;;  %vm377_vm13 = vcmp.lt.s32.totalorder %v1059_v30, 2  ;;  %v384_v45 = vsel %vm376_vm9, %v363_v9, %v366_v13 }
  0x5d   :  { %v385_v42 = vsel %vm379_vm10, %v372_v52, 920167782  ;;  %v223_v31 = vsel %vm140_vm5, %v222_v12, %v221_v25  ;;  %v704_v62 = vmin.u32 %v307_v19, %v1086_v27  ;;  %v380_v44 = vsel %vm376_vm9, %v360_v22, %v363_v9 }
  0x5e   :  { %v388_v33 = vsel %vm376_vm9, %v366_v13, %v369_v18  ;;  %v226_v46 = vsel %vm1063_vm8, %v871_v4, %v223_v31  ;;  %v382_v47 = vsel %vm378_vm12, %v366_v13, %v381_v38  ;;  %v386_v48 = vsel %vm378_vm12, %v369_v18, %v385_v42 }
  0x5f   :  { %v389_v49 = vsel %vm379_vm10, %v375_v32, 1326507024  ;;  %757 = vcosq.f32 %v226_v46  ;;  %v309_v50 = vclz %v704_v62  ;;  %v387_v53 = vsel %vm377_vm13, %v384_v45, %v386_v48 }
  0x60   :  { %v390_v8 = vsel %vm378_vm12, %v372_v52, %v389_v49  ;;  %759 = vsinq.f32 %v226_v46  ;;  %v1128_v54 = vmul.u32.u64.low %v392_v7, %v387_v53  ;;  %v1129_v28 = vmul.u32.u64.high %v392_v7, %v387_v53, %v1128_v54 }
  0x61   :  { %v391_v36 = vsel %vm377_vm13, %v388_v33, %v390_v8  ;;  %v754_v56 = vpop.eup %753  ;;  %v705_v58 = vadd.s32 4294967294, %v309_v50  ;;  %v383_v59 = vsel %vm377_vm13, %v380_v44, %v382_v47  ;;  %vm133_vm14 = vcmp.eq.s32.totalorder %v1090_v55, 2 }
  0x62   :  { %v1133_v61 = vmul.u32.u64.low %v392_v7, %v391_v36  ;;  %v1134_v34 = vmul.u32.u64.high %v392_v7, %v391_v36, %v1133_v61  ;;  %v756_v21 = vpop.eup %755  ;;  %vm1139_vm15 = vcmp.le.f32.partialorder %v241_v29, 0.7853982  ;;  %v447_v9 = vand.u32 2147483647, %v972_v17 }
  0x63   :  { %v450_v15 = vand.u32 2139095040, %v972_v17  ;;  %v1145_v6 = vand.u32 3, %v227_v11  ;;  %v297_v30 = vadd.s32 %v1033_v60, %v1030_v57  ;;  %vm706_vm0 = vcmp.lt.s32.totalorder %v705_v58, 0 }
  0x64   :  { %v328_v16 = vsel %vm243_vm11, %v327_v40, %v303_v63  ;;  %v312_v13 = vsel %vm706_vm0, 0, %v705_v58  ;;  %v399_v18 = vmul.u32 %v392_v7, %v383_v59  ;;  %v402_v29 = vadd.s32 1, %v1129_v28 }
  0x65   :  { %v451_v52 = vshrl.u32 %v450_v15, 23  ;;  %v134_v20 = vxor.u32 2147483648, %v754_v56  ;;  %v313_v25 = vsub.s32 32, %v312_v13  ;;  %v314_v32 = vshll.u32 %v1086_v27, %v312_v13 }
  0x66   :  { %v317_v12 = vsub.s32 4294967266, %v312_v13  ;;  %v131_v19 = vxor.u32 2147483648, %v756_v21  ;;  %vm401_vm1 = vc.u32 %v1134_v34, %v1128_v54  ;;  %v454_v57 = vand.u32 8388607, %v447_v9 }
  0x67   :  { %v711_v11 = vadd.s32 4294967169, %v451_v52  ;;  %vm130_vm2 = vcmp.eq.s32.totalorder %v1090_v55, 0  ;;  %v315_v60 = vshrl.u32 %v297_v30, %v313_v25  ;;  %v403_v7 = vsel %vm401_vm1, %v402_v29, %v1129_v28 }
  0x68   :  { %v318_v63 = vadd.s32 127, %v317_v12  ;;  %vm129_vm3 = vcmp.lt.s32.totalorder %v1090_v55, 2  ;;  %vm232_vm4 = vcmp.lt.s32.totalorder %v1145_v6, 2  ;;  %v404_v38 = vadd.s32 %v403_v7, %v399_v18 }
  0x69   :  { %v457_v27 = vadd.s32 1, %v711_v11  ;;  %v758_v40 = vpop.eup %757  ;;  %v135_v45 = vsel %vm133_vm14, %v134_v20, %v756_v21  ;;  %v316_v42 = vor.u32 %v315_v60, %v314_v32  ;;  %v330_v62 = vsel %vm1139_vm15, 0, %v328_v16 }
  0x6a   :  { %v319_v31 = vshll.u32 %v318_v63, 23  ;;  %v760_v44 = vpop.eup %759  ;;  %v132_v33 = vsel %vm130_vm2, %v754_v56, %v131_v19  ;;  %v405_v46 = vadd.s32 536870912, %v404_v38  ;;  %v455_v47 = vor.u32 8388608, %v454_v57 }
  0x6b   :  { %vm458_vm5 = vcmp.gt.s32.totalorder %v457_v27, 0  ;;  %v237_v48 = vxor.u32 2147483648, %v758_v40  ;;  %v323_v50 = vcvt.s32.f32 %v316_v42  ;;  %v234_v8 = vxor.u32 2147483648, %v760_v44 }
  0x6c   :  { %v320_v49 = vor.u32 4788187, %v319_v31  ;;  %v459_v53 = vsel %vm458_vm5, %v457_v27, 0  ;;  %vm236_vm6 = vcmp.eq.s32.totalorder %v1145_v6, 2  ;;  %v1165_v36 = vshrl.u32 %v405_v46, 30 }
  0x6d   :  { %v461_v28 = vand.u32 31, %v459_v53  ;;  %v1169_v58 = vsel %vm129_vm3, %v132_v33, %v135_v45  ;;  %vm233_vm7 = vcmp.eq.s32.totalorder %v1145_v6, 0  ;;  %v1172_v59 = vand.u32 3, %v330_v62 }
  0x6e   :  { %v321_v56 = vand.u32 2147483647, %v320_v49  ;;  %v1175_v61 = vadd.s32 %v1128_v54, %v1134_v34  ;;  %v407_v21 = vshll.u32 %v1165_v36, 30  ;;  %v553_v30 = vand.u32 2139095040, %v977_v23 }
  0x6f   :  { %v462_v15 = vsub.s32 32, %v461_v28  ;;  %v238_v16 = vsel %vm236_vm6, %v237_v48, %v760_v44  ;;  %v1179_v18 = vshll.u32 %v455_v47, 8  ;;  %v550_v55 = vand.u32 2147483647, %v977_v23 }
  0x70   :  { %v324_v13 = vmul.f32 %v323_v50, %v321_v56  ;;  %v235_v29 = vsel %vm233_vm7, %v758_v40, %v234_v8  ;;  %v1182_v52 = vsub.s32 %v404_v38, %v407_v21  ;;  %v464_v20 = vshll.u32 %v829_v35, %v461_v28 }
  0x71   :  { %v465_v25 = vshrl.u32 %v830_v37, %v462_v15  ;;  %v467_v34 = vshll.u32 %v830_v37, %v461_v28  ;;  %v468_v32 = vshrl.u32 %v831_v39, %v462_v15  ;;  %v470_v12 = vshll.u32 %v831_v39, %v461_v28 }
  0x72   :  { %v325_v54 = vxor.u32 2147483648, %v324_v13  ;;  %v410_v19 = vsub.s32 0, %v1182_v52  ;;  %v460_v11 = vshrl.u32 %v459_v53, 5  ;;  %v471_v57 = vshrl.u32 %v832_v41, %v462_v15 }
  0x73   :  { %v554_v60 = vshrl.u32 %v553_v30, 23  ;;  %v239_v63 = vsel %vm232_vm4, %v235_v29, %v238_v16  ;;  %v473_v38 = vshll.u32 %v832_v41, %v461_v28  ;;  %v474_v27 = vshrl.u32 %v833_v43, %v462_v15 }
  0x74   :  { %v326_v7 = vsel %vm243_vm11, %v325_v54, %v324_v13  ;;  %vm127_vm8 = vweird.f32 %v868_v3  ;;  %v708_v45 = vmin.u32 %v410_v19, %v1182_v52  ;;  %v463_v42 = vshrl.u32 %v829_v35, %v462_v15 }
  0x75   :  { %v329_v40 = vsel %vm1139_vm15, %v874_v5, %v326_v7  ;;  %v466_v31 = vor.u32 %v465_v25, %v464_v20  ;;  %vm346_vm9 = vcmp.lt.s32.totalorder %v885_v24, 0  ;;  %v469_v6 = vor.u32 %v468_v32, %v467_v34 }
  0x76   :  { %761 = vcosq.f32 %v329_v40  ;;  %v472_v62 = vor.u32 %v471_v57, %v470_v12  ;;  %v475_v44 = vor.u32 %v474_v27, %v473_v38  ;;  %vm230_vm10 = vweird.f32 %v871_v4 }
  0x77   :  { %763 = vsinq.f32 %v329_v40  ;;  %v412_v33 = vclz %v708_v45  ;;  %v476_v46 = vshll.u32 %v833_v43, %v461_v28  ;;  %v477_v22 = vshrl.u32 %v834_v51, %v462_v15 }
  0x78   :  { %vm479_vm11 = vcmp.lt.s32.totalorder %v460_v11, 1  ;;  %vm480_vm12 = vcmp.lt.s32.totalorder %v460_v11, 2  ;;  %vm481_vm13 = vcmp.lt.s32.totalorder %v460_v11, 3  ;;  %vm482_vm14 = vcmp.lt.s32.totalorder %v460_v11, 4 }
  0x79   :  { %v709_v47 = vadd.s32 4294967294, %v412_v33  ;;  %v478_v48 = vor.u32 %v477_v22, %v476_v46  ;;  %v483_v49 = vsel %vm479_vm11, %v463_v42, %v466_v31  ;;  %v484_v50 = vsel %vm482_vm14, %v472_v62, 2102212464 }
  0x7a   :  { %v485_v53 = vsel %vm481_vm13, %v469_v6, %v484_v50  ;;  %v487_v8 = vsel %vm479_vm11, %v466_v31, %v469_v6  ;;  %v488_v56 = vsel %vm482_vm14, %v475_v44, 920167782  ;;  %v491_v21 = vsel %vm479_vm11, %v469_v6, %v472_v62 }
  0x7b   :  { %vm710_vm15 = vcmp.lt.s32.totalorder %v709_v47, 0  ;;  %v430_v30 = vsub.s32 4, %v1165_v36  ;;  %v489_v28 = vsel %vm481_vm13, %v472_v62, %v488_v56  ;;  %v492_v16 = vsel %vm482_vm14, %v478_v48, 1326507024 }
  0x7c   :  { %v415_v15 = vsel %vm710_vm15, 0, %v709_v47  ;;  %v486_v13 = vsel %vm480_vm12, %v483_v49, %v485_v53  ;;  %v490_v29 = vsel %vm480_vm12, %v487_v8, %v489_v28  ;;  %v493_v20 = vsel %vm481_vm13, %v475_v44, %v492_v16 }
  0x7d   :  { %v416_v25 = vsub.s32 32, %v415_v15  ;;  %v417_v54 = vshll.u32 %v1182_v52, %v415_v15  ;;  %v420_v34 = vsub.s32 4294967266, %v415_v15  ;;  %v494_v32 = vsel %vm480_vm12, %v491_v21, %v493_v20 }
  0x7e   :  { %v1216_v12 = vmul.u32.u64.low %v1179_v18, %v494_v32  ;;  %v1217_v19 = vmul.u32.u64.high %v1179_v18, %v494_v32, %v1216_v12  ;;  %v1220_v57 = vmul.u32.u64.low %v1179_v18, %v490_v29  ;;  %v1221_v7 = vmul.u32.u64.high %v1179_v18, %v490_v29, %v1220_v57 }
  0x7f   :  { %v418_v38 = vshrl.u32 %v1175_v61, %v416_v25  ;;  %v421_v27 = vadd.s32 127, %v420_v34  ;;  %v431_v40 = vsel %vm346_vm9, %v430_v30, %v1165_v36  ;;  %v715_v52 = vadd.s32 4294967169, %v554_v60 }
  0x80   :  { %v762_v45 = vpop.eup %761  ;;  %v137_v11 = vsel %vm127_vm8, nan, %v1169_v58  ;;  %vm1233_vm0 = vcmp.le.f32.partialorder %v344_v26, 0.7853982  ;;  %v557_v61 = vand.u32 8388607, %v550_v55  ;;  %v502_v36 = vmul.u32 %v1179_v18, %v486_v13 }
  0x81   :  { %v764_v31 = vpop.eup %763  ;;  %v419_v6 = vor.u32 %v418_v38, %v417_v54  ;;  %v422_v62 = vshll.u32 %v421_v27, 23  ;;  %v560_v60 = vadd.s32 1, %v715_v52  ;;  %v240_v44 = vsel %vm230_vm10, nan, %v239_v63 }
  0x82   :  { %v433_v3 = vsel %vm1233_vm0, 0, %v431_v40  ;;  %vm504_vm1 = vc.u32 %v1217_v19, %v1220_v57  ;;  %v505_v26 = vadd.s32 1, %v1221_v7  ;;  %vm335_vm2 = vcmp.lt.s32.totalorder %v1172_v59, 2 }
  0x83   :  { %v340_v58 = vxor.u32 2147483648, %v762_v45  ;;  %v423_v33 = vor.u32 4788187, %v422_v62  ;;  %v426_v46 = vcvt.s32.f32 %v419_v6  ;;  %vm561_vm3 = vcmp.gt.s32.totalorder %v560_v60, 0 }
  0x84   :  { %v337_v22 = vxor.u32 2147483648, %v764_v31  ;;  %vm339_vm4 = vcmp.eq.s32.totalorder %v1172_v59, 2  ;;  %v506_v4 = vsel %vm504_vm1, %v505_v26, %v1221_v7  ;;  %v562_v18 = vsel %vm561_vm3, %v560_v60, 0 }
  0x85   :  { %vm336_vm5 = vcmp.eq.s32.totalorder %v1172_v59, 0  ;;  %v424_v63 = vand.u32 2147483647, %v423_v33  ;;  %v507_v47 = vadd.s32 %v506_v4, %v502_v36  ;;  %v558_v48 = vor.u32 8388608, %v557_v61 }
  0x86   :  { %vm333_vm6 = vweird.f32 %v874_v5  ;;  %v1252_v49 = vand.u32 3, %v433_v3  ;;  %v564_v50 = vand.u32 31, %v562_v18  ;;  %v1254_v53 = vmul.f32 %v137_v11, %v137_v11 }
  0x87   :  { %v1256_v8 = vmul.f32 %v240_v44, %v240_v44  ;;  %v341_v56 = vsel %vm339_vm4, %v340_v58, %v764_v31  ;;  %v427_v21 = vmul.f32 %v426_v46, %v424_v63  ;;  %v508_v30 = vadd.s32 536870912, %v507_v47 }
  0x88   :  { %v563_v28 = vshrl.u32 %v562_v18, 5  ;;  %v338_v16 = vsel %vm336_vm5, %v762_v45, %v337_v22  ;;  %v565_v15 = vsub.s32 32, %v564_v50  ;;  %v567_v13 = vshll.u32 %v829_v35, %v564_v50 }
  0x89   :  { %v570_v29 = vshll.u32 %v830_v37, %v564_v50  ;;  %v428_v20 = vxor.u32 2147483648, %v427_v21  ;;  %v1260_v25 = vshrl.u32 %v508_v30, 30  ;;  %v576_v54 = vshll.u32 %v832_v41, %v564_v50 }
  0x8a   :  { %v1263_v34 = vshll.u32 %v558_v48, 8  ;;  %v568_v32 = vshrl.u32 %v830_v37, %v565_v15  ;;  %v571_v12 = vshrl.u32 %v831_v39, %v565_v15  ;;  %v573_v7 = vshll.u32 %v831_v39, %v564_v50 }
  0x8b   :  { %v574_v38 = vshrl.u32 %v832_v41, %v565_v15  ;;  %v429_v27 = vsel %vm346_vm9, %v428_v20, %v427_v21  ;;  %v510_v40 = vshll.u32 %v1260_v25, 30  ;;  %v577_v52 = vshrl.u32 %v833_v43, %v565_v15 }
  0x8c   :  { %vm582_vm7 = vcmp.lt.s32.totalorder %v563_v28, 1  ;;  %vm659_vm8 = vcmp.lt.f32.partialorder %v861_v0, 5.0  ;;  %v432_v37 = vsel %vm1233_vm0, %v885_v24, %v429_v27  ;;  %v569_v45 = vor.u32 %v568_v32, %v567_v13 }
  0x8d   :  { %v572_v11 = vor.u32 %v571_v12, %v570_v29  ;;  %v579_v39 = vshll.u32 %v833_v43, %v564_v50  ;;  %765 = vcosq.f32 %v432_v37  ;;  %v1278_v41 = vsub.s32 %v507_v47, %v510_v40 }
  0x8e   :  { %v566_v61 = vshrl.u32 %v829_v35, %v565_v15  ;;  %v578_v31 = vor.u32 %v577_v52, %v576_v54  ;;  %v342_v6 = vsel %vm335_vm2, %v338_v16, %v341_v56  ;;  %767 = vsinq.f32 %v432_v37 }
  0x8f   :  { %v575_v62 = vor.u32 %v574_v38, %v573_v7  ;;  %v580_v36 = vshrl.u32 %v834_v51, %v565_v15  ;;  %v513_v42 = vsub.s32 0, %v1278_v41  ;;  %vm583_vm9 = vcmp.lt.s32.totalorder %v563_v28, 2 }
  0x90   :  { %vm584_vm10 = vcmp.lt.s32.totalorder %v563_v28, 3  ;;  %vm585_vm11 = vcmp.lt.s32.totalorder %v563_v28, 4  ;;  %v590_v44 = vsel %vm582_vm7, %v569_v45, %v572_v11  ;;  %v343_v35 = vsel %vm333_vm6, nan, %v342_v6 }
  0x91   :  { %v581_v60 = vor.u32 %v580_v36, %v579_v39  ;;  %v587_v43 = vsel %vm585_vm11, %v575_v62, 2102212464  ;;  %v591_v3 = vsel %vm585_vm11, %v578_v31, 920167782  ;;  %vm438_vm12 = vcmp.lt.s32.totalorder %v1252_v49, 2 }
  0x92   :  { %v712_v59 = vmin.u32 %v513_v42, %v1278_v41  ;;  %v586_v26 = vsel %vm582_vm7, %v566_v61, %v569_v45  ;;  %vm660_vm13 = vcmp.lt.f32.partialorder %v863_v1, 5.0  ;;  %v588_v51 = vsel %vm584_vm10, %v572_v11, %v587_v43  ;;  %v777_v45 = vld [vmem:[#allocation2 + $0x18] sm:$0xff] }
  0x93   :  { %v592_v58 = vsel %vm584_vm10, %v575_v62, %v591_v3  ;;  %v594_v33 = vsel %vm582_vm7, %v572_v11, %v575_v62  ;;  %v595_v46 = vsel %vm585_vm11, %v581_v60, 1326507024  ;;  %vm661_vm14 = vcmp.lt.f32.partialorder %v865_v2, 5.0 }
  0x94   :  { %v515_v22 = vclz %v712_v59  ;;  %v593_v4 = vsel %vm583_vm9, %v590_v44, %v592_v58  ;;  %v596_v5 = vsel %vm584_vm10, %v578_v31, %v595_v46  ;;  %v589_v18 = vsel %vm583_vm9, %v586_v26, %v588_v51 }
  0x95   :  { %v597_v63 = vsel %vm583_vm9, %v594_v33, %v596_v5  ;;  %v1301_v47 = vmul.u32.u64.low %v1263_v34, %v593_v4  ;;  %v1302_v48 = vmul.u32.u64.high %v1263_v34, %v593_v4, %v1301_v47  ;;  %v655_v30 = vmul.f32 %v343_v35, %v343_v35 }
  0x96   :  { %v713_v50 = vadd.s32 4294967294, %v515_v22  ;;  %v1306_v56 = vmul.u32.u64.low %v1263_v34, %v597_v63  ;;  %v1307_v21 = vmul.u32.u64.high %v1263_v34, %v597_v63, %v1306_v56  ;;  %vm439_vm15 = vcmp.eq.s32.totalorder %v1252_v49, 0 }
  0x97   :  { %vm442_vm0 = vcmp.eq.s32.totalorder %v1252_v49, 2  ;;  %v503_v16 = vadd.s32 %v1220_v57, %v1217_v19  ;;  %v665_v28 = vsel %vm659_vm8, %v1254_v53, 0.0  ;;  %v766_v15 = vpop.eup %765  ;;  %v666_v13 = vsel %vm660_vm13, %v1256_v8, 0.0 }
  0x98   :  { %vm714_vm1 = vcmp.lt.s32.totalorder %v713_v50, 0  ;;  %v667_v29 = vsel %vm661_vm14, %v655_v30, 0.0  ;;  %vm671_vm2 = vcmask 818176   ;;  %v768_v20 = vpop.eup %767  ;;  %v443_v54 = vxor.u32 2147483648, %v766_v15 }
  0x99   :  { %v518_v32 = vsel %vm714_vm1, 0, %v713_v50  ;;  %v605_v12 = vmul.u32 %v1263_v34, %v589_v18  ;;  %v608_v19 = vadd.s32 1, %v1302_v48  ;;  %672 = vst.msk [vmem:[#allocation5] sm:$0xff] %vm671_vm2, %v665_v28  ;;  %673 = vst.msk [vmem:[#allocation5 + $0x8] sm:$0xff] %vm671_vm2, %v666_v13  ;;  %v440_v0 = vxor.u32 2147483648, %v768_v20 }
  0x9a   :  { %674 = vst.msk [vmem:[#allocation5 + $0x10] sm:$0xff] %vm671_vm2, %v667_v29  ;;  %v519_v1 = vsub.s32 32, %v518_v32  ;;  %v520_v57 = vshll.u32 %v1278_v41, %v518_v32  ;;  %v523_v2 = vsub.s32 4294967266, %v518_v32  ;;  %vm436_vm3 = vweird.f32 %v885_v24 }
  0x9b   :  { %v444_v53 = vsel %vm442_vm0, %v443_v54, %v768_v20  ;;  %vm607_vm4 = vc.u32 %v1307_v21, %v1301_v47  ;;  %v441_v8 = vsel %vm439_vm15, %v766_v15, %v440_v0  ;;  %vm662_vm5 = vcmp.lt.f32.partialorder %v777_v45, 5.0 }
  0x9c   :  { %v521_v34 = vshrl.u32 %v503_v16, %v519_v1  ;;  %v524_v7 = vadd.s32 127, %v523_v2  ;;  %v609_v38 = vsel %vm607_vm4, %v608_v19, %v1302_v48  ;;  %v445_v27 = vsel %vm438_vm12, %v441_v8, %v444_v53 }
  0x9d   :  { %v610_v40 = vadd.s32 %v609_v38, %v605_v12  ;;  %v446_v52 = vsel %vm436_vm3, nan, %v445_v27  ;;  %vm449_vm6 = vcmp.lt.s32.totalorder %v972_v17, 0  ;;  %vm448_vm7 = vcmp.le.f32.partialorder %v447_v9, 0.7853982 }
  0x9e   :  { %v522_v37 = vor.u32 %v521_v34, %v520_v57  ;;  %v525_v24 = vshll.u32 %v524_v7, 23  ;;  %v656_v39 = vmul.f32 %v446_v52, %v446_v52  ;;  %v533_v43 = vsub.s32 4, %v1260_v25 }
  0x9f   :  { %v611_v11 = vadd.s32 536870912, %v610_v40  ;;  %v606_v46 = vadd.s32 %v1301_v47, %v1307_v21  ;;  %vm539_vm12 = vweird.f32 %v972_v17  ;;  %vm663_vm13 = vcmp.lt.f32.partialorder %v957_v10, 5.0 }
  0xa0   :  { %v526_v41 = vor.u32 4788187, %v525_v24  ;;  %v529_v61 = vcvt.s32.f32 %v522_v37  ;;  %v668_v6 = vsel %vm662_vm5, %v656_v39, 0.0  ;;  %v534_v26 = vsel %vm449_vm6, %v533_v43, %v1260_v25 }
  0xa1   :  { %v612_v31 = vshrl.u32 %v611_v11, 30  ;;  %675 = vst.msk [vmem:[#allocation5 + $0x18] sm:$0xff] %vm671_vm2, %v668_v6  ;;  %v536_v58 = vsel %vm448_vm7, 0, %v534_v26  ;;  %vm552_vm14 = vcmp.lt.s32.totalorder %v977_v23, 0  ;;  %vm551_vm15 = vcmp.le.f32.partialorder %v550_v55, 0.7853982 }
  0xa2   :  { %v527_v62 = vand.u32 2147483647, %v526_v41  ;;  %v540_v9 = vand.u32 3, %v536_v58  ;;  %vm642_vm4 = vweird.f32 %v977_v23  ;;  %vm664_vm5 = vcmp.lt.f32.partialorder %v966_v14, 5.0 }
  0xa3   :  { %v613_v36 = vshll.u32 %v612_v31, 30  ;;  %v636_v0 = vsub.s32 4, %v612_v31 }
  0xa4   :  { %v530_v42 = vmul.f32 %v529_v61, %v527_v62  ;;  %vm545_vm9 = vcmp.eq.s32.totalorder %v540_v9, 2  ;;  %vm542_vm10 = vcmp.eq.s32.totalorder %v540_v9, 0  ;;  %vm541_vm11 = vcmp.lt.s32.totalorder %v540_v9, 2 }
  0xa5   :  { %v614_v49 = vsub.s32 %v610_v40, %v613_v36  ;;  %v637_v2 = vsel %vm552_vm14, %v636_v0, %v612_v31 }
  0xa6   :  { %v531_v60 = vxor.u32 2147483648, %v530_v42  ;;  %v639_v53 = vsel %vm551_vm15, 0, %v637_v2 }
  0xa7   :  { %v616_v44 = vsub.s32 0, %v614_v49  ;;  %v643_v10 = vand.u32 3, %v639_v53 }
  0xa8   :  { %v532_v3 = vsel %vm449_vm6, %v531_v60, %v530_v42 }
  0xa9   :  { %v535_v35 = vsel %vm448_vm7, %v972_v17, %v532_v3  ;;  %v716_v59 = vmin.u32 %v616_v44, %v614_v49  ;;  %vm648_vm0 = vcmp.eq.s32.totalorder %v643_v10, 2  ;;  %vm645_vm1 = vcmp.eq.s32.totalorder %v643_v10, 0 }
  0xaa   :  { %769 = vcosq.f32 %v535_v35  ;;  %vm644_vm3 = vcmp.lt.s32.totalorder %v643_v10, 2 }
  0xab   :  { %771 = vsinq.f32 %v535_v35  ;;  %v618_v51 = vclz %v716_v59 }
  0xad   :  { %v717_v33 = vadd.s32 4294967294, %v618_v51 }
  0xaf   :  { %vm718_vm8 = vcmp.lt.s32.totalorder %v717_v33, 0 }
  0xb0   :  { %v621_v22 = vsel %vm718_vm8, 0, %v717_v33 }
  0xb1   :  { %v622_v4 = vsub.s32 32, %v621_v22  ;;  %v623_v5 = vshll.u32 %v614_v49, %v621_v22  ;;  %v626_v18 = vsub.s32 4294967266, %v621_v22 }
  0xb3   :  { %v624_v63 = vshrl.u32 %v606_v46, %v622_v4  ;;  %v627_v48 = vadd.s32 127, %v626_v18 }
  0xb4   :  { %v770_v50 = vpop.eup %769 }
  0xb5   :  { %v772_v56 = vpop.eup %771  ;;  %v546_v25 = vxor.u32 2147483648, %v770_v50  ;;  %v625_v30 = vor.u32 %v624_v63, %v623_v5  ;;  %v628_v16 = vshll.u32 %v627_v48, 23 }
  0xb6   :  { %v543_v28 = vxor.u32 2147483648, %v772_v56 }
  0xb7   :  { %v547_v47 = vsel %vm545_vm9, %v546_v25, %v772_v56  ;;  %v629_v21 = vor.u32 4788187, %v628_v16  ;;  %v632_v15 = vcvt.s32.f32 %v625_v30 }
  0xb8   :  { %v544_v13 = vsel %vm542_vm10, %v770_v50, %v543_v28 }
  0xb9   :  { %v548_v29 = vsel %vm541_vm11, %v544_v13, %v547_v47  ;;  %v630_v20 = vand.u32 2147483647, %v629_v21 }
  0xba   :  { %v549_v54 = vsel %vm539_vm12, nan, %v548_v29 }
  0xbb   :  { %v633_v32 = vmul.f32 %v632_v15, %v630_v20  ;;  %v657_v12 = vmul.f32 %v549_v54, %v549_v54 }
  0xbd   :  { %v634_v19 = vxor.u32 2147483648, %v633_v32  ;;  %v669_v1 = vsel %vm663_vm13, %v657_v12, 0.0 }
  0xbe   :  { %676 = vst.msk [vmem:[#allocation5 + $0x20] sm:$0xff] %vm671_vm2, %v669_v1 }
  0xbf   :  { %v635_v17 = vsel %vm552_vm14, %v634_v19, %v633_v32 }
  0xc0   :  { %v638_v57 = vsel %vm551_vm15, %v977_v23, %v635_v17 }
  0xc1   :  { %773 = vcosq.f32 %v638_v57 }
  0xc2   :  { %775 = vsinq.f32 %v638_v57 }
  0xcb   :  { %v774_v8 = vpop.eup %773 }
  0xcc   :  { %v776_v34 = vpop.eup %775  ;;  %v649_v7 = vxor.u32 2147483648, %v774_v8 }
  0xcd   :  { %v646_v55 = vxor.u32 2147483648, %v776_v34 }
  0xce   :  { %v650_v38 = vsel %vm648_vm0, %v649_v7, %v776_v34 }
  0xcf   :  { %v647_v27 = vsel %vm645_vm1, %v774_v8, %v646_v55 }
  0xd0   :  { %v651_v40 = vsel %vm644_vm3, %v647_v27, %v650_v38 }
  0xd1   :  { %v652_v52 = vsel %vm642_vm4, nan, %v651_v40 }
  0xd2   :  { %v658_v37 = vmul.f32 %v652_v52, %v652_v52 }
  0xd4   :  { %v670_v24 = vsel %vm664_vm5, %v658_v37, 0.0 }
  0xd5   :  { %677 = vst.msk [vmem:[#allocation5 + $0x28] sm:$0xff] %vm671_vm2, %v670_v24 }
  0xd6   :  { %811 = shalt.err (!%p808_p12)
}
  0xd7   :  { %s812_s24 = scalar_lea.hbm %s1372_s1, 768 }
  0xd8   :  { %p813_p13 = scmp.ne.s32.totalorder %s1372_s1, %s812_s24  ;;  %p816_p0 = scmp.lt.u32.totalorder %s812_s24, %s1372_s1 }
  0xda   :  { %p818_p1 = pnand %p816_p0, %p813_p13 }
  0xdc   :  { %821 = shalt.err (!%p818_p1)
}
  0xdd   :  { %689 = dma.vmem_to_hbm [thread:$0]  %s684_s20, 768, %s1372_s1, [#allocation4], %s827_s16, %s827_s16, %s828_s17  }
  0xde   :  { %824 = dma.done.wait [#allocation4], 768  }
  0xdf   :  { %825 = vsyncadd [#allocation4], 4294966528 }
  0xe0   :  { %693 = vsyncpa [#allocation3], 1 }
  0xe1   :  { %694 = vsyncpa [#allocation4], 1 }

</bundles_post_ra>
